<compile_context>
chip_gen: v5e
topology: v5e:2x2
jax: 0.10.0
libtpu: 0.0.40
codegen_flags: <defaults>
</compile_context>

<pallas_src>
import functools

import jax
import jax.numpy as jnp
from jax.experimental import pallas as pl
from jax.experimental.pallas import tpu as pltpu


# ------------------------------ fused block kernel ---------------------------

def _fused_block_kernel(x_ref, ln1_ref, wqkv_ref, wo_ref, ln2_ref, wgu_ref,
                        wdn_ref, cos_ref, sin_ref, o_ref, qkv_hm, oh_hm,
                        *, num_heads, head_dim, inter_size, eps):
    S = x_ref.shape[1]
    H = x_ref.shape[2]
    D = head_dim
    half = D // 2
    nh = num_heads

    x = x_ref[0].astype(jnp.float32)                        # [S, H] residual stream (f32)

    def rms(t, w_ref):                                      # RMSNorm kept in f32
        var = jnp.mean(t * t, axis=-1, keepdims=True)
        return t * jax.lax.rsqrt(var + eps) * w_ref[...]

    def rotate_half_all(t):                                 # per-head [-hi | lo], static slices
        parts = []
        for h in range(nh):
            blk = t[:, h * D:(h + 1) * D]
            parts.append(jnp.concatenate([-blk[:, half:], blk[:, :half]], axis=-1))
        return jnp.concatenate(parts, axis=-1)

    # --------------------------- attention sub-block -------------------------
    h1 = rms(x, ln1_ref).astype(jnp.bfloat16)
    # One native-bf16 MXU pass for Q|K|V (1/sqrt(D) pre-folded into Wq).
    qkv = jnp.dot(h1, wqkv_ref[...], preferred_element_type=jnp.float32)   # [S, 3H] f32

    cos = cos_ref[...]                                      # [S, H] full-width tables
    sin = sin_ref[...]
    q_all = qkv[:, :H]
    k_all = qkv[:, H:2 * H]
    q_all = q_all * cos + rotate_half_all(q_all) * sin      # RoPE, all heads at once (VPU)
    k_all = k_all * cos + rotate_half_all(k_all) * sin

    # Scatter to head-major bf16 VMEM scratch: the head loop then only uses
    # leading-dim dynamic indexing and feeds the MXU bf16 operands.
    for h in range(nh):
        qkv_hm[h] = q_all[:, h * D:(h + 1) * D].astype(jnp.bfloat16)
        qkv_hm[nh + h] = k_all[:, h * D:(h + 1) * D].astype(jnp.bfloat16)
        qkv_hm[2 * nh + h] = qkv[:, 2 * H + h * D:2 * H + (h + 1) * D].astype(jnp.bfloat16)

    rows = jax.lax.broadcasted_iota(jnp.int32, (S, S), 0)
    cols = jax.lax.broadcasted_iota(jnp.int32, (S, S), 1)
    causal = cols <= rows

    def head_body(hh, carry):
        q = qkv_hm[hh]                                      # [S, D] bf16
        k = qkv_hm[nh + hh]
        v = qkv_hm[2 * nh + hh]
        # Single K=D contraction for the scores, f32 accumulation on the MXU.
        s = jax.lax.dot_general(q, k, (((1,), (1,)), ((), ())),
                                preferred_element_type=jnp.float32)        # [S, S]
        s = jnp.where(causal, s, -1e30)
        m = jnp.max(s, axis=-1, keepdims=True)
        p = jnp.exp(s - m)                                  # softmax statistics stay f32
        l = jnp.sum(p, axis=-1, keepdims=True)
        o = jnp.dot(p.astype(jnp.bfloat16), v, preferred_element_type=jnp.float32)
        oh_hm[hh] = (o * pl.reciprocal(l, approx=True)).astype(jnp.bfloat16)
        return carry

    jax.lax.fori_loop(0, nh, head_body, 0)

    # Re-assemble heads once, then a single K=H bf16 output-projection matmul.
    o_cat = jnp.concatenate([oh_hm[h] for h in range(nh)], axis=-1)        # [S, H] bf16
    attn = jnp.dot(o_cat, wo_ref[...], preferred_element_type=jnp.float32)

    x1 = x + attn                                           # residual #1 (f32)

    # ------------------------ feed-forward sub-block (SwiGLU) ----------------
    h2 = rms(x1, ln2_ref).astype(jnp.bfloat16)
    gu = jnp.dot(h2, wgu_ref[...], preferred_element_type=jnp.float32)     # [S, 2I]
    g = gu[:, :inter_size]
    u = gu[:, inter_size:]
    f = (g * jax.nn.sigmoid(g) * u).astype(jnp.bfloat16)                   # silu(g) * u
    d = jnp.dot(f, wdn_ref[...], preferred_element_type=jnp.float32)       # [S, H]

    o_ref[0] = (x1 + d).astype(o_ref.dtype)                 # residual #2 (f32)


# ------------------------------- JAX-side glue --------------------------------

def _rope_tables(S, D, num_heads, theta=10000.0):
    """Full-width [S, H] cos/sin tables (duplicated halves, tiled across heads)."""
    inv_freq = 1.0 / (theta ** (jnp.arange(0, D, 2, dtype=jnp.float32) / D))
    pos = jnp.arange(S, dtype=jnp.float32)
    freqs = jnp.outer(pos, inv_freq)                        # [S, D/2]
    emb = jnp.concatenate([freqs, freqs], axis=-1)          # [S, D]
    cos = jnp.tile(jnp.cos(emb), (1, num_heads))            # [S, H]
    sin = jnp.tile(jnp.sin(emb), (1, num_heads))
    return cos, sin


def _pick_vmem_limit_bytes():
    # Raise the default scoped-VMEM limit (16/32 MiB) with per-generation headroom
    # (~100 MiB on 128-MiB parts, ~54 MiB on v7x's 64-MiB-per-TC parts).
    try:
        cap = pltpu.get_tpu_info().vmem_capacity_bytes
        return min(100 * 1024 * 1024, int(cap * 0.85))
    except Exception:
        return 48 * 1024 * 1024


def prepare_block_params(params, *, num_heads):
    """One-time weight preparation: fuse Wq|Wk|Wv and Wgate|Wup, fold 1/sqrt(D)
    into Wq, cast all matmul weights to bf16.  Done at weight-load time so no
    weight traffic is re-generated on every forward call."""
    H = params["wq"].shape[0]
    D = H // num_heads
    scale = 1.0 / (D ** 0.5)
    wqkv = jnp.concatenate(
        [params["wq"] * scale, params["wk"], params["wv"]], axis=1)        # [H, 3H]
    wgu = jnp.concatenate([params["w_gate"], params["w_up"]], axis=1)      # [H, 2I]
    return {
        "ln1": params["ln1_w"].reshape(1, H).astype(jnp.float32),
        "ln2": params["ln2_w"].reshape(1, H).astype(jnp.float32),
        "wqkv": wqkv.astype(jnp.bfloat16),
        "wo": params["wo"].astype(jnp.bfloat16),
        "wgu": wgu.astype(jnp.bfloat16),
        "wdn": params["w_down"].astype(jnp.bfloat16),
    }


def transformer_block_forward(x, prep, *, num_heads, eps=1e-6):
    """x: [B, S, H] float32; prep: output of prepare_block_params.
    Returns (output [B, S, H], router_logits=None)."""
    B, S, H = x.shape
    D = H // num_heads
    I = prep["wdn"].shape[0]
    cos, sin = _rope_tables(S, D, num_heads)

    kernel = functools.partial(
        _fused_block_kernel,
        num_heads=num_heads, head_dim=D, inter_size=I, eps=eps)

    flops = (2 * B * S * H * (3 * H + H + 2 * I) + 2 * B * S * I * H
             + 4 * B * num_heads * S * S * D)
    transcendentals = B * num_heads * S * S + B * S * I + 2 * B * S
    bytes_accessed = (2 * B * S * H * 4                                    # x + out (f32)
                      + 2 * (H * 3 * H + H * H + H * 2 * I + I * H)        # bf16 weights
                      + 2 * S * H * 4 + 2 * H * 4)                         # rope + ln

    out = pl.pallas_call(
        kernel,
        out_shape=jax.ShapeDtypeStruct((B, S, H), x.dtype),
        grid=(B,),                                          # parallel axis (>=2 iters -> v7x megacore)
        in_specs=[
            pl.BlockSpec((1, S, H), lambda b: (b, 0, 0)),   # x (per-batch tile)
            pl.BlockSpec((1, H), lambda b: (0, 0)),         # ln1_w (f32)
            pl.BlockSpec((H, 3 * H), lambda b: (0, 0)),     # fused Wq|Wk|Wv (bf16)
            pl.BlockSpec((H, H), lambda b: (0, 0)),         # Wo (bf16)
            pl.BlockSpec((1, H), lambda b: (0, 0)),         # ln2_w (f32)
            pl.BlockSpec((H, 2 * I), lambda b: (0, 0)),     # fused Wgate|Wup (bf16)
            pl.BlockSpec((I, H), lambda b: (0, 0)),         # Wdown (bf16)
            pl.BlockSpec((S, H), lambda b: (0, 0)),         # RoPE cos (full width)
            pl.BlockSpec((S, H), lambda b: (0, 0)),         # RoPE sin (full width)
        ],
        out_specs=pl.BlockSpec((1, S, H), lambda b: (b, 0, 0)),
        scratch_shapes=[
            pltpu.VMEM((3 * num_heads, S, D), jnp.bfloat16),  # head-major RoPE'd Q/K + V
            pltpu.VMEM((num_heads, S, D), jnp.bfloat16),      # per-head attention outputs
        ],
        compiler_params=pltpu.CompilerParams(
            dimension_semantics=("parallel",),
            vmem_limit_bytes=_pick_vmem_limit_bytes()),
        cost_estimate=pl.CostEstimate(
            flops=flops, transcendentals=transcendentals,
            bytes_accessed=bytes_accessed),
    )(x, prep["ln1"], prep["wqkv"], prep["wo"], prep["ln2"],
      prep["wgu"], prep["wdn"], cos, sin)

    return out, None   # router_logits is None (is_moe=False)


# ------------------------------ pure-JAX reference ----------------------------

def _rotate_half(t):
    d = t.shape[-1] // 2
    return jnp.concatenate([-t[..., d:], t[..., :d]], axis=-1)


def _rope_cos_sin_full(S, D, theta=10000.0):
    inv_freq = 1.0 / (theta ** (jnp.arange(0, D, 2, dtype=jnp.float32) / D))
    pos = jnp.arange(S, dtype=jnp.float32)
    freqs = jnp.outer(pos, inv_freq)
    emb = jnp.concatenate([freqs, freqs], axis=-1)
    return jnp.cos(emb), jnp.sin(emb)


def reference_forward(x, params, *, num_heads, eps=1e-6):
    B, S, H = x.shape
    D = H // num_heads
    N = B * S
    x2d = x.reshape(N, H)

    def rms(t, w):
        t = t.astype(jnp.float32)
        return t * jax.lax.rsqrt(jnp.mean(t * t, -1, keepdims=True) + eps) * w

    h = rms(x2d, params["ln1_w"])
    q, k, v = h @ params["wq"], h @ params["wk"], h @ params["wv"]

    def to_heads(t):
        return t.reshape(B, S, num_heads, D).transpose(0, 2, 1, 3).reshape(B * num_heads, S, D)

    q, k, v = to_heads(q), to_heads(k), to_heads(v)
    cos, sin = _rope_cos_sin_full(S, D)
    q = q * cos[None] + _rotate_half(q) * sin[None]
    k = k * cos[None] + _rotate_half(k) * sin[None]
    s = jnp.einsum("bqd,bkd->bqk", q, k) / (D ** 0.5)
    rows = jnp.arange(S)[:, None]
    cols = jnp.arange(S)[None, :]
    s = jnp.where(cols <= rows, s, -1e30)
    p = jax.nn.softmax(s, axis=-1)
    o = jnp.einsum("bqk,bkd->bqd", p, v)
    o = o.reshape(B, num_heads, S, D).transpose(0, 2, 1, 3).reshape(N, H) @ params["wo"]
    x1 = x2d + o
    h2 = rms(x1, params["ln2_w"])
    g, u = h2 @ params["w_gate"], h2 @ params["w_up"]
    out = x1 + (g * jax.nn.sigmoid(g) * u) @ params["w_down"]
    return out.reshape(B, S, H)


# ------------------------------------ main -------------------------------------

if __name__ == "__main__":
    B, S, H = 2, 8, 32          # batch, seq, hidden
    num_heads = 4               # head_dim = 8
    I = 64                      # FFN intermediate size

    key = jax.random.PRNGKey(0)
    ks = jax.random.split(key, 9)
    wscale = 0.02
    params = {
        "ln1_w": jnp.ones((H,), jnp.float32),
        "ln2_w": jnp.ones((H,), jnp.float32),
        "wq": wscale * jax.random.normal(ks[0], (H, H), jnp.float32),
        "wk": wscale * jax.random.normal(ks[1], (H, H), jnp.float32),
        "wv": wscale * jax.random.normal(ks[2], (H, H), jnp.float32),
        "wo": wscale * jax.random.normal(ks[3], (H, H), jnp.float32),
        "w_gate": wscale * jax.random.normal(ks[4], (H, I), jnp.float32),
        "w_up": wscale * jax.random.normal(ks[5], (H, I), jnp.float32),
        "w_down": wscale * jax.random.normal(ks[6], (I, H), jnp.float32),
    }
    x = jax.random.normal(ks[7], (B, S, H), jnp.float32)

    prepared = prepare_block_params(params, num_heads=num_heads)   # one-time weight prep
    out, router_logits = transformer_block_forward(x, prepared, num_heads=num_heads)
    out = jax.block_until_ready(out)

    ref = reference_forward(x, params, num_heads=num_heads)
    assert out.shape == (B, S, H)
    assert router_logits is None
    # Tolerance accommodates bf16 MXU operands + the approximate (EUP) softmax
    # reciprocal vs the all-f32 reference; structural errors would be far larger.
    assert jnp.allclose(out, ref, rtol=1e-2, atol=1e-2), "mismatch vs reference"

    print("KERNEL_OK")
</pallas_src>

<mosaic_0001>
module attributes {stable_mosaic.version = 11 : i64} {
  func.func @_fused_block_kernel(%arg0: i32, %arg1: memref<1x8x32xf32, #tpu.memory_space<vmem>>, %arg2: memref<1x32xf32, #tpu.memory_space<vmem>>, %arg3: memref<32x96xbf16, #tpu.memory_space<vmem>>, %arg4: memref<32x32xbf16, #tpu.memory_space<vmem>>, %arg5: memref<1x32xf32, #tpu.memory_space<vmem>>, %arg6: memref<32x128xbf16, #tpu.memory_space<vmem>>, %arg7: memref<64x32xbf16, #tpu.memory_space<vmem>>, %arg8: memref<8x32xf32, #tpu.memory_space<vmem>>, %arg9: memref<8x32xf32, #tpu.memory_space<vmem>>, %arg10: memref<1x8x32xf32, #tpu.memory_space<vmem>>, %arg11: memref<12x8x8xbf16, #tpu.memory_space<vmem>>, %arg12: memref<4x8x8xbf16, #tpu.memory_space<vmem>>) attributes {dimension_semantics = [#tpu.dimension_semantics<parallel>], iteration_bounds = array<i64: 2>, scalar_prefetch = 0 : i64, scratch_operands = 2 : i64, tpu.core_type = #tpu.core_type<tc>, window_params = [{transform_indices = @transform_0, window_bounds = array<i64: 1, 8, 32>}, {pipeline_mode = #tpu.pipeline_mode<synchronous>, transform_indices = @transform_1, window_bounds = array<i64: 1, 32>}, {pipeline_mode = #tpu.pipeline_mode<synchronous>, transform_indices = @transform_2, window_bounds = array<i64: 32, 96>}, {pipeline_mode = #tpu.pipeline_mode<synchronous>, transform_indices = @transform_3, window_bounds = array<i64: 32, 32>}, {pipeline_mode = #tpu.pipeline_mode<synchronous>, transform_indices = @transform_4, window_bounds = array<i64: 1, 32>}, {pipeline_mode = #tpu.pipeline_mode<synchronous>, transform_indices = @transform_5, window_bounds = array<i64: 32, 128>}, {pipeline_mode = #tpu.pipeline_mode<synchronous>, transform_indices = @transform_6, window_bounds = array<i64: 64, 32>}, {pipeline_mode = #tpu.pipeline_mode<synchronous>, transform_indices = @transform_7, window_bounds = array<i64: 8, 32>}, {pipeline_mode = #tpu.pipeline_mode<synchronous>, transform_indices = @transform_8, window_bounds = array<i64: 8, 32>}, {transform_indices = @transform_9, window_bounds = array<i64: 1, 8, 32>}]} {
    %c0 = arith.constant 0 : index
    %c0_0 = arith.constant 0 : index
    %c0_1 = arith.constant 0 : index
    %0 = vector.load %arg1[%c0, %c0_0, %c0_1] : memref<1x8x32xf32, #tpu.memory_space<vmem>>, vector<1x8x32xf32>
    %1 = vector.shape_cast %0 : vector<1x8x32xf32> to vector<8x32xf32>
    %2 = arith.mulf %1, %1 : vector<8x32xf32>
    %cst = arith.constant dense<0.000000e+00> : vector<8xf32>
    %3 = vector.multi_reduction <add>, %2, %cst [1] : vector<8x32xf32> to vector<8xf32>
    %4 = vector.shape_cast %3 : vector<8xf32> to vector<8x1xf32>
    %cst_2 = arith.constant 3.200000e+01 : f32
    %5 = vector.broadcast %cst_2 : f32 to vector<8x1xf32>
    %6 = arith.divf %4, %5 : vector<8x1xf32>
    %cst_3 = arith.constant 9.99999997E-7 : f32
    %7 = vector.broadcast %cst_3 : f32 to vector<8x1xf32>
    %8 = arith.addf %6, %7 : vector<8x1xf32>
    %9 = math.rsqrt %8 : vector<8x1xf32>
    %10 = vector.broadcast %9 : vector<8x1xf32> to vector<8x32xf32>
    %11 = arith.mulf %1, %10 : vector<8x32xf32>
    %c0_4 = arith.constant 0 : index
    %c0_5 = arith.constant 0 : index
    %12 = vector.load %arg2[%c0_4, %c0_5] : memref<1x32xf32, #tpu.memory_space<vmem>>, vector<1x32xf32>
    %13 = vector.broadcast %12 : vector<1x32xf32> to vector<8x32xf32>
    %14 = arith.mulf %11, %13 : vector<8x32xf32>
    %15 = arith.truncf %14 : vector<8x32xf32> to vector<8x32xbf16>
    %c0_6 = arith.constant 0 : index
    %c0_7 = arith.constant 0 : index
    %16 = vector.load %arg3[%c0_6, %c0_7] : memref<32x96xbf16, #tpu.memory_space<vmem>>, vector<32x96xbf16>
    %cst_8 = arith.constant dense<0.000000e+00> : vector<8x96xf32>
    %17 = tpu.matmul %15, %16, %cst_8 {dimension_numbers = #tpu.dot_dimension_numbers<[1], [0], [0], [1], [0, 0, 1, 1], [], []>} : vector<8x32xbf16>, vector<32x96xbf16>, vector<8x96xf32> -> vector<8x96xf32>
    %c0_9 = arith.constant 0 : index
    %c0_10 = arith.constant 0 : index
    %18 = vector.load %arg8[%c0_9, %c0_10] : memref<8x32xf32, #tpu.memory_space<vmem>>, vector<8x32xf32>
    %c0_11 = arith.constant 0 : index
    %c0_12 = arith.constant 0 : index
    %19 = vector.load %arg9[%c0_11, %c0_12] : memref<8x32xf32, #tpu.memory_space<vmem>>, vector<8x32xf32>
    %20 = vector.extract_strided_slice %17 {offsets = [0, 0], sizes = [8, 32], strides = [1, 1]} : vector<8x96xf32> to vector<8x32xf32>
    %21 = vector.extract_strided_slice %17 {offsets = [0, 32], sizes = [8, 32], strides = [1, 1]} : vector<8x96xf32> to vector<8x32xf32>
    %22 = arith.mulf %20, %18 : vector<8x32xf32>
    %23 = vector.extract_strided_slice %20 {offsets = [0, 0], sizes = [8, 8], strides = [1, 1]} : vector<8x32xf32> to vector<8x8xf32>
    %24 = vector.extract_strided_slice %23 {offsets = [0, 4], sizes = [8, 4], strides = [1, 1]} : vector<8x8xf32> to vector<8x4xf32>
    %cst_13 = arith.constant 0.000000e+00 : f32
    %25 = vector.broadcast %cst_13 : f32 to vector<8x4xf32>
    %26 = arith.subf %25, %24 : vector<8x4xf32>
    %27 = vector.extract_strided_slice %23 {offsets = [0, 0], sizes = [8, 4], strides = [1, 1]} : vector<8x8xf32> to vector<8x4xf32>
    %28 = tpu.concatenate %26, %27 in 1 : vector<8x4xf32>, vector<8x4xf32> -> vector<8x8xf32>
    %29 = vector.extract_strided_slice %20 {offsets = [0, 8], sizes = [8, 8], strides = [1, 1]} : vector<8x32xf32> to vector<8x8xf32>
    %30 = vector.extract_strided_slice %29 {offsets = [0, 4], sizes = [8, 4], strides = [1, 1]} : vector<8x8xf32> to vector<8x4xf32>
    %cst_14 = arith.constant 0.000000e+00 : f32
    %31 = vector.broadcast %cst_14 : f32 to vector<8x4xf32>
    %32 = arith.subf %31, %30 : vector<8x4xf32>
    %33 = vector.extract_strided_slice %29 {offsets = [0, 0], sizes = [8, 4], strides = [1, 1]} : vector<8x8xf32> to vector<8x4xf32>
    %34 = tpu.concatenate %32, %33 in 1 : vector<8x4xf32>, vector<8x4xf32> -> vector<8x8xf32>
    %35 = vector.extract_strided_slice %20 {offsets = [0, 16], sizes = [8, 8], strides = [1, 1]} : vector<8x32xf32> to vector<8x8xf32>
    %36 = vector.extract_strided_slice %35 {offsets = [0, 4], sizes = [8, 4], strides = [1, 1]} : vector<8x8xf32> to vector<8x4xf32>
    %cst_15 = arith.constant 0.000000e+00 : f32
    %37 = vector.broadcast %cst_15 : f32 to vector<8x4xf32>
    %38 = arith.subf %37, %36 : vector<8x4xf32>
    %39 = vector.extract_strided_slice %35 {offsets = [0, 0], sizes = [8, 4], strides = [1, 1]} : vector<8x8xf32> to vector<8x4xf32>
    %40 = tpu.concatenate %38, %39 in 1 : vector<8x4xf32>, vector<8x4xf32> -> vector<8x8xf32>
    %41 = vector.extract_strided_slice %20 {offsets = [0, 24], sizes = [8, 8], strides = [1, 1]} : vector<8x32xf32> to vector<8x8xf32>
    %42 = vector.extract_strided_slice %41 {offsets = [0, 4], sizes = [8, 4], strides = [1, 1]} : vector<8x8xf32> to vector<8x4xf32>
    %cst_16 = arith.constant 0.000000e+00 : f32
    %43 = vector.broadcast %cst_16 : f32 to vector<8x4xf32>
    %44 = arith.subf %43, %42 : vector<8x4xf32>
    %45 = vector.extract_strided_slice %41 {offsets = [0, 0], sizes = [8, 4], strides = [1, 1]} : vector<8x8xf32> to vector<8x4xf32>
    %46 = tpu.concatenate %44, %45 in 1 : vector<8x4xf32>, vector<8x4xf32> -> vector<8x8xf32>
    %47 = tpu.concatenate %28, %34, %40, %46 in 1 : vector<8x8xf32>, vector<8x8xf32>, vector<8x8xf32>, vector<8x8xf32> -> vector<8x32xf32>
    %48 = arith.mulf %47, %19 : vector<8x32xf32>
    %49 = arith.addf %22, %48 : vector<8x32xf32>
    %50 = arith.mulf %21, %18 : vector<8x32xf32>
    %51 = vector.extract_strided_slice %21 {offsets = [0, 0], sizes = [8, 8], strides = [1, 1]} : vector<8x32xf32> to vector<8x8xf32>
    %52 = vector.extract_strided_slice %51 {offsets = [0, 4], sizes = [8, 4], strides = [1, 1]} : vector<8x8xf32> to vector<8x4xf32>
    %cst_17 = arith.constant 0.000000e+00 : f32
    %53 = vector.broadcast %cst_17 : f32 to vector<8x4xf32>
    %54 = arith.subf %53, %52 : vector<8x4xf32>
    %55 = vector.extract_strided_slice %51 {offsets = [0, 0], sizes = [8, 4], strides = [1, 1]} : vector<8x8xf32> to vector<8x4xf32>
    %56 = tpu.concatenate %54, %55 in 1 : vector<8x4xf32>, vector<8x4xf32> -> vector<8x8xf32>
    %57 = vector.extract_strided_slice %21 {offsets = [0, 8], sizes = [8, 8], strides = [1, 1]} : vector<8x32xf32> to vector<8x8xf32>
    %58 = vector.extract_strided_slice %57 {offsets = [0, 4], sizes = [8, 4], strides = [1, 1]} : vector<8x8xf32> to vector<8x4xf32>
    %cst_18 = arith.constant 0.000000e+00 : f32
    %59 = vector.broadcast %cst_18 : f32 to vector<8x4xf32>
    %60 = arith.subf %59, %58 : vector<8x4xf32>
    %61 = vector.extract_strided_slice %57 {offsets = [0, 0], sizes = [8, 4], strides = [1, 1]} : vector<8x8xf32> to vector<8x4xf32>
    %62 = tpu.concatenate %60, %61 in 1 : vector<8x4xf32>, vector<8x4xf32> -> vector<8x8xf32>
    %63 = vector.extract_strided_slice %21 {offsets = [0, 16], sizes = [8, 8], strides = [1, 1]} : vector<8x32xf32> to vector<8x8xf32>
    %64 = vector.extract_strided_slice %63 {offsets = [0, 4], sizes = [8, 4], strides = [1, 1]} : vector<8x8xf32> to vector<8x4xf32>
    %cst_19 = arith.constant 0.000000e+00 : f32
    %65 = vector.broadcast %cst_19 : f32 to vector<8x4xf32>
    %66 = arith.subf %65, %64 : vector<8x4xf32>
    %67 = vector.extract_strided_slice %63 {offsets = [0, 0], sizes = [8, 4], strides = [1, 1]} : vector<8x8xf32> to vector<8x4xf32>
    %68 = tpu.concatenate %66, %67 in 1 : vector<8x4xf32>, vector<8x4xf32> -> vector<8x8xf32>
    %69 = vector.extract_strided_slice %21 {offsets = [0, 24], sizes = [8, 8], strides = [1, 1]} : vector<8x32xf32> to vector<8x8xf32>
    %70 = vector.extract_strided_slice %69 {offsets = [0, 4], sizes = [8, 4], strides = [1, 1]} : vector<8x8xf32> to vector<8x4xf32>
    %cst_20 = arith.constant 0.000000e+00 : f32
    %71 = vector.broadcast %cst_20 : f32 to vector<8x4xf32>
    %72 = arith.subf %71, %70 : vector<8x4xf32>
    %73 = vector.extract_strided_slice %69 {offsets = [0, 0], sizes = [8, 4], strides = [1, 1]} : vector<8x8xf32> to vector<8x4xf32>
    %74 = tpu.concatenate %72, %73 in 1 : vector<8x4xf32>, vector<8x4xf32> -> vector<8x8xf32>
    %75 = tpu.concatenate %56, %62, %68, %74 in 1 : vector<8x8xf32>, vector<8x8xf32>, vector<8x8xf32>, vector<8x8xf32> -> vector<8x32xf32>
    %76 = arith.mulf %75, %19 : vector<8x32xf32>
    %77 = arith.addf %50, %76 : vector<8x32xf32>
    %78 = vector.extract_strided_slice %49 {offsets = [0, 0], sizes = [8, 8], strides = [1, 1]} : vector<8x32xf32> to vector<8x8xf32>
    %79 = arith.truncf %78 : vector<8x8xf32> to vector<8x8xbf16>
    %c0_21 = arith.constant 0 : index
    %c0_22 = arith.constant 0 : index
    %c0_23 = arith.constant 0 : index
    %80 = vector.load %arg11[%c0_21, %c0_22, %c0_23] : memref<12x8x8xbf16, #tpu.memory_space<vmem>>, vector<1x8x8xbf16>
    %81 = vector.shape_cast %80 : vector<1x8x8xbf16> to vector<8x8xbf16>
    %82 = vector.shape_cast %79 : vector<8x8xbf16> to vector<1x8x8xbf16>
    tpu.vector_store %arg11[%c0_21, %c0_22, %c0_23], %82 {strides = array<i32>} : memref<12x8x8xbf16, #tpu.memory_space<vmem>>, vector<1x8x8xbf16>,
    %83 = vector.extract_strided_slice %77 {offsets = [0, 0], sizes = [8, 8], strides = [1, 1]} : vector<8x32xf32> to vector<8x8xf32>
    %84 = arith.truncf %83 : vector<8x8xf32> to vector<8x8xbf16>
    %c4 = arith.constant 4 : index
    %c0_24 = arith.constant 0 : index
    %c0_25 = arith.constant 0 : index
    %85 = vector.load %arg11[%c4, %c0_24, %c0_25] : memref<12x8x8xbf16, #tpu.memory_space<vmem>>, vector<1x8x8xbf16>
    %86 = vector.shape_cast %85 : vector<1x8x8xbf16> to vector<8x8xbf16>
    %87 = vector.shape_cast %84 : vector<8x8xbf16> to vector<1x8x8xbf16>
    tpu.vector_store %arg11[%c4, %c0_24, %c0_25], %87 {strides = array<i32>} : memref<12x8x8xbf16, #tpu.memory_space<vmem>>, vector<1x8x8xbf16>,
    %88 = vector.extract_strided_slice %17 {offsets = [0, 64], sizes = [8, 8], strides = [1, 1]} : vector<8x96xf32> to vector<8x8xf32>
    %89 = arith.truncf %88 : vector<8x8xf32> to vector<8x8xbf16>
    %c8 = arith.constant 8 : index
    %c0_26 = arith.constant 0 : index
    %c0_27 = arith.constant 0 : index
    %90 = vector.load %arg11[%c8, %c0_26, %c0_27] : memref<12x8x8xbf16, #tpu.memory_space<vmem>>, vector<1x8x8xbf16>
    %91 = vector.shape_cast %90 : vector<1x8x8xbf16> to vector<8x8xbf16>
    %92 = vector.shape_cast %89 : vector<8x8xbf16> to vector<1x8x8xbf16>
    tpu.vector_store %arg11[%c8, %c0_26, %c0_27], %92 {strides = array<i32>} : memref<12x8x8xbf16, #tpu.memory_space<vmem>>, vector<1x8x8xbf16>,
    %93 = vector.extract_strided_slice %49 {offsets = [0, 8], sizes = [8, 8], strides = [1, 1]} : vector<8x32xf32> to vector<8x8xf32>
    %94 = arith.truncf %93 : vector<8x8xf32> to vector<8x8xbf16>
    %c1 = arith.constant 1 : index
    %c0_28 = arith.constant 0 : index
    %c0_29 = arith.constant 0 : index
    %95 = vector.load %arg11[%c1, %c0_28, %c0_29] : memref<12x8x8xbf16, #tpu.memory_space<vmem>>, vector<1x8x8xbf16>
    %96 = vector.shape_cast %95 : vector<1x8x8xbf16> to vector<8x8xbf16>
    %97 = vector.shape_cast %94 : vector<8x8xbf16> to vector<1x8x8xbf16>
    tpu.vector_store %arg11[%c1, %c0_28, %c0_29], %97 {strides = array<i32>} : memref<12x8x8xbf16, #tpu.memory_space<vmem>>, vector<1x8x8xbf16>,
    %98 = vector.extract_strided_slice %77 {offsets = [0, 8], sizes = [8, 8], strides = [1, 1]} : vector<8x32xf32> to vector<8x8xf32>
    %99 = arith.truncf %98 : vector<8x8xf32> to vector<8x8xbf16>
    %c5 = arith.constant 5 : index
    %c0_30 = arith.constant 0 : index
    %c0_31 = arith.constant 0 : index
    %100 = vector.load %arg11[%c5, %c0_30, %c0_31] : memref<12x8x8xbf16, #tpu.memory_space<vmem>>, vector<1x8x8xbf16>
    %101 = vector.shape_cast %100 : vector<1x8x8xbf16> to vector<8x8xbf16>
    %102 = vector.shape_cast %99 : vector<8x8xbf16> to vector<1x8x8xbf16>
    tpu.vector_store %arg11[%c5, %c0_30, %c0_31], %102 {strides = array<i32>} : memref<12x8x8xbf16, #tpu.memory_space<vmem>>, vector<1x8x8xbf16>,
    %103 = vector.extract_strided_slice %17 {offsets = [0, 72], sizes = [8, 8], strides = [1, 1]} : vector<8x96xf32> to vector<8x8xf32>
    %104 = arith.truncf %103 : vector<8x8xf32> to vector<8x8xbf16>
    %c9 = arith.constant 9 : index
    %c0_32 = arith.constant 0 : index
    %c0_33 = arith.constant 0 : index
    %105 = vector.load %arg11[%c9, %c0_32, %c0_33] : memref<12x8x8xbf16, #tpu.memory_space<vmem>>, vector<1x8x8xbf16>
    %106 = vector.shape_cast %105 : vector<1x8x8xbf16> to vector<8x8xbf16>
    %107 = vector.shape_cast %104 : vector<8x8xbf16> to vector<1x8x8xbf16>
    tpu.vector_store %arg11[%c9, %c0_32, %c0_33], %107 {strides = array<i32>} : memref<12x8x8xbf16, #tpu.memory_space<vmem>>, vector<1x8x8xbf16>,
    %108 = vector.extract_strided_slice %49 {offsets = [0, 16], sizes = [8, 8], strides = [1, 1]} : vector<8x32xf32> to vector<8x8xf32>
    %109 = arith.truncf %108 : vector<8x8xf32> to vector<8x8xbf16>
    %c2 = arith.constant 2 : index
    %c0_34 = arith.constant 0 : index
    %c0_35 = arith.constant 0 : index
    %110 = vector.load %arg11[%c2, %c0_34, %c0_35] : memref<12x8x8xbf16, #tpu.memory_space<vmem>>, vector<1x8x8xbf16>
    %111 = vector.shape_cast %110 : vector<1x8x8xbf16> to vector<8x8xbf16>
    %112 = vector.shape_cast %109 : vector<8x8xbf16> to vector<1x8x8xbf16>
    tpu.vector_store %arg11[%c2, %c0_34, %c0_35], %112 {strides = array<i32>} : memref<12x8x8xbf16, #tpu.memory_space<vmem>>, vector<1x8x8xbf16>,
    %113 = vector.extract_strided_slice %77 {offsets = [0, 16], sizes = [8, 8], strides = [1, 1]} : vector<8x32xf32> to vector<8x8xf32>
    %114 = arith.truncf %113 : vector<8x8xf32> to vector<8x8xbf16>
    %c6 = arith.constant 6 : index
    %c0_36 = arith.constant 0 : index
    %c0_37 = arith.constant 0 : index
    %115 = vector.load %arg11[%c6, %c0_36, %c0_37] : memref<12x8x8xbf16, #tpu.memory_space<vmem>>, vector<1x8x8xbf16>
    %116 = vector.shape_cast %115 : vector<1x8x8xbf16> to vector<8x8xbf16>
    %117 = vector.shape_cast %114 : vector<8x8xbf16> to vector<1x8x8xbf16>
    tpu.vector_store %arg11[%c6, %c0_36, %c0_37], %117 {strides = array<i32>} : memref<12x8x8xbf16, #tpu.memory_space<vmem>>, vector<1x8x8xbf16>,
    %118 = vector.extract_strided_slice %17 {offsets = [0, 80], sizes = [8, 8], strides = [1, 1]} : vector<8x96xf32> to vector<8x8xf32>
    %119 = arith.truncf %118 : vector<8x8xf32> to vector<8x8xbf16>
    %c10 = arith.constant 10 : index
    %c0_38 = arith.constant 0 : index
    %c0_39 = arith.constant 0 : index
    %120 = vector.load %arg11[%c10, %c0_38, %c0_39] : memref<12x8x8xbf16, #tpu.memory_space<vmem>>, vector<1x8x8xbf16>
    %121 = vector.shape_cast %120 : vector<1x8x8xbf16> to vector<8x8xbf16>
    %122 = vector.shape_cast %119 : vector<8x8xbf16> to vector<1x8x8xbf16>
    tpu.vector_store %arg11[%c10, %c0_38, %c0_39], %122 {strides = array<i32>} : memref<12x8x8xbf16, #tpu.memory_space<vmem>>, vector<1x8x8xbf16>,
    %123 = vector.extract_strided_slice %49 {offsets = [0, 24], sizes = [8, 8], strides = [1, 1]} : vector<8x32xf32> to vector<8x8xf32>
    %124 = arith.truncf %123 : vector<8x8xf32> to vector<8x8xbf16>
    %c3 = arith.constant 3 : index
    %c0_40 = arith.constant 0 : index
    %c0_41 = arith.constant 0 : index
    %125 = vector.load %arg11[%c3, %c0_40, %c0_41] : memref<12x8x8xbf16, #tpu.memory_space<vmem>>, vector<1x8x8xbf16>
    %126 = vector.shape_cast %125 : vector<1x8x8xbf16> to vector<8x8xbf16>
    %127 = vector.shape_cast %124 : vector<8x8xbf16> to vector<1x8x8xbf16>
    tpu.vector_store %arg11[%c3, %c0_40, %c0_41], %127 {strides = array<i32>} : memref<12x8x8xbf16, #tpu.memory_space<vmem>>, vector<1x8x8xbf16>,
    %128 = vector.extract_strided_slice %77 {offsets = [0, 24], sizes = [8, 8], strides = [1, 1]} : vector<8x32xf32> to vector<8x8xf32>
    %129 = arith.truncf %128 : vector<8x8xf32> to vector<8x8xbf16>
    %c7 = arith.constant 7 : index
    %c0_42 = arith.constant 0 : index
    %c0_43 = arith.constant 0 : index
    %130 = vector.load %arg11[%c7, %c0_42, %c0_43] : memref<12x8x8xbf16, #tpu.memory_space<vmem>>, vector<1x8x8xbf16>
    %131 = vector.shape_cast %130 : vector<1x8x8xbf16> to vector<8x8xbf16>
    %132 = vector.shape_cast %129 : vector<8x8xbf16> to vector<1x8x8xbf16>
    tpu.vector_store %arg11[%c7, %c0_42, %c0_43], %132 {strides = array<i32>} : memref<12x8x8xbf16, #tpu.memory_space<vmem>>, vector<1x8x8xbf16>,
    %133 = vector.extract_strided_slice %17 {offsets = [0, 88], sizes = [8, 8], strides = [1, 1]} : vector<8x96xf32> to vector<8x8xf32>
    %134 = arith.truncf %133 : vector<8x8xf32> to vector<8x8xbf16>
    %c11 = arith.constant 11 : index
    %c0_44 = arith.constant 0 : index
    %c0_45 = arith.constant 0 : index
    %135 = vector.load %arg11[%c11, %c0_44, %c0_45] : memref<12x8x8xbf16, #tpu.memory_space<vmem>>, vector<1x8x8xbf16>
    %136 = vector.shape_cast %135 : vector<1x8x8xbf16> to vector<8x8xbf16>
    %137 = vector.shape_cast %134 : vector<8x8xbf16> to vector<1x8x8xbf16>
    tpu.vector_store %arg11[%c11, %c0_44, %c0_45], %137 {strides = array<i32>} : memref<12x8x8xbf16, #tpu.memory_space<vmem>>, vector<1x8x8xbf16>,
    %138 = tpu.iota {dimensions = array<i32: 0>} : vector<8x8xi32>
    %139 = tpu.iota {dimensions = array<i32: 1>} : vector<8x8xi32>
    %140 = arith.cmpi sle, %139, %138 : vector<8x8xi32>
    %c0_i32 = arith.constant 0 : i32
    %c4_i32 = arith.constant 4 : i32
    %141 = arith.addi %c0_i32, %c4_i32 : i32
    %c1_i32 = arith.constant 1 : i32
    scf.for %arg13 = %c0_i32 to %141 step %c1_i32  : i32 {
      %186 = arith.index_cast %arg13 : i32 to index
      %c0_77 = arith.constant 0 : index
      %c0_78 = arith.constant 0 : index
      %187 = vector.load %arg11[%186, %c0_77, %c0_78] : memref<12x8x8xbf16, #tpu.memory_space<vmem>>, vector<1x8x8xbf16>
      %188 = vector.shape_cast %187 : vector<1x8x8xbf16> to vector<8x8xbf16>
      %c4_i32_79 = arith.constant 4 : i32
      %189 = arith.addi %c4_i32_79, %arg13 : i32
      %190 = arith.index_cast %189 : i32 to index
      %c0_80 = arith.constant 0 : index
      %c0_81 = arith.constant 0 : index
      %191 = vector.load %arg11[%190, %c0_80, %c0_81] : memref<12x8x8xbf16, #tpu.memory_space<vmem>>, vector<1x8x8xbf16>
      %192 = vector.shape_cast %191 : vector<1x8x8xbf16> to vector<8x8xbf16>
      %c8_i32 = arith.constant 8 : i32
      %193 = arith.addi %c8_i32, %arg13 : i32
      %194 = arith.index_cast %193 : i32 to index
      %c0_82 = arith.constant 0 : index
      %c0_83 = arith.constant 0 : index
      %195 = vector.load %arg11[%194, %c0_82, %c0_83] : memref<12x8x8xbf16, #tpu.memory_space<vmem>>, vector<1x8x8xbf16>
      %196 = vector.shape_cast %195 : vector<1x8x8xbf16> to vector<8x8xbf16>
      %cst_84 = arith.constant dense<0.000000e+00> : vector<8x8xf32>
      %197 = tpu.matmul %188, %192, %cst_84 {dimension_numbers = #tpu.dot_dimension_numbers<[1], [1], [0], [0], [0, 0, 1, 0], [], []>} : vector<8x8xbf16>, vector<8x8xbf16>, vector<8x8xf32> -> vector<8x8xf32>
      %cst_85 = arith.constant -1.000000e+30 : f32
      %198 = vector.broadcast %cst_85 : f32 to vector<8x8xf32>
      %199 = arith.select %140, %197, %198 : vector<8x8xi1>, vector<8x8xf32>
      %cst_86 = arith.constant dense<0xFF800000> : vector<8xf32>
      %200 = vector.multi_reduction <maximumf>, %199, %cst_86 [1] : vector<8x8xf32> to vector<8xf32>
      %201 = vector.shape_cast %200 : vector<8xf32> to vector<8x1xf32>
      %202 = vector.broadcast %201 : vector<8x1xf32> to vector<8x8xf32>
      %203 = arith.subf %199, %202 : vector<8x8xf32>
      %204 = math.exp %203 : vector<8x8xf32>
      %cst_87 = arith.constant dense<0.000000e+00> : vector<8xf32>
      %205 = vector.multi_reduction <add>, %204, %cst_87 [1] : vector<8x8xf32> to vector<8xf32>
      %206 = vector.shape_cast %205 : vector<8xf32> to vector<8x1xf32>
      %207 = arith.truncf %204 : vector<8x8xf32> to vector<8x8xbf16>
      %cst_88 = arith.constant dense<0.000000e+00> : vector<8x8xf32>
      %208 = tpu.matmul %207, %196, %cst_88 {dimension_numbers = #tpu.dot_dimension_numbers<[1], [0], [0], [1], [0, 0, 1, 1], [], []>} : vector<8x8xbf16>, vector<8x8xbf16>, vector<8x8xf32> -> vector<8x8xf32>
      %209 = tpu.reciprocal %206 {approx = true} : vector<8x1xf32> -> vector<8x1xf32>
      %210 = vector.broadcast %209 : vector<8x1xf32> to vector<8x8xf32>
      %211 = arith.mulf %208, %210 : vector<8x8xf32>
      %212 = arith.truncf %211 : vector<8x8xf32> to vector<8x8xbf16>
      %213 = arith.index_cast %arg13 : i32 to index
      %c0_89 = arith.constant 0 : index
      %c0_90 = arith.constant 0 : index
      %214 = vector.load %arg12[%213, %c0_89, %c0_90] : memref<4x8x8xbf16, #tpu.memory_space<vmem>>, vector<1x8x8xbf16>
      %215 = vector.shape_cast %214 : vector<1x8x8xbf16> to vector<8x8xbf16>
      %216 = vector.shape_cast %212 : vector<8x8xbf16> to vector<1x8x8xbf16>
      tpu.vector_store %arg12[%213, %c0_89, %c0_90], %216 {strides = array<i32>} : memref<4x8x8xbf16, #tpu.memory_space<vmem>>, vector<1x8x8xbf16>,
    }
    %c4_i32_46 = arith.constant 4 : i32
    %c0_47 = arith.constant 0 : index
    %c0_48 = arith.constant 0 : index
    %c0_49 = arith.constant 0 : index
    %142 = vector.load %arg12[%c0_47, %c0_48, %c0_49] : memref<4x8x8xbf16, #tpu.memory_space<vmem>>, vector<1x8x8xbf16>
    %143 = vector.shape_cast %142 : vector<1x8x8xbf16> to vector<8x8xbf16>
    %c1_50 = arith.constant 1 : index
    %c0_51 = arith.constant 0 : index
    %c0_52 = arith.constant 0 : index
    %144 = vector.load %arg12[%c1_50, %c0_51, %c0_52] : memref<4x8x8xbf16, #tpu.memory_space<vmem>>, vector<1x8x8xbf16>
    %145 = vector.shape_cast %144 : vector<1x8x8xbf16> to vector<8x8xbf16>
    %c2_53 = arith.constant 2 : index
    %c0_54 = arith.constant 0 : index
    %c0_55 = arith.constant 0 : index
    %146 = vector.load %arg12[%c2_53, %c0_54, %c0_55] : memref<4x8x8xbf16, #tpu.memory_space<vmem>>, vector<1x8x8xbf16>
    %147 = vector.shape_cast %146 : vector<1x8x8xbf16> to vector<8x8xbf16>
    %c3_56 = arith.constant 3 : index
    %c0_57 = arith.constant 0 : index
    %c0_58 = arith.constant 0 : index
    %148 = vector.load %arg12[%c3_56, %c0_57, %c0_58] : memref<4x8x8xbf16, #tpu.memory_space<vmem>>, vector<1x8x8xbf16>
    %149 = vector.shape_cast %148 : vector<1x8x8xbf16> to vector<8x8xbf16>
    %150 = tpu.concatenate %143, %145, %147, %149 in 1 : vector<8x8xbf16>, vector<8x8xbf16>, vector<8x8xbf16>, vector<8x8xbf16> -> vector<8x32xbf16>
    %c0_59 = arith.constant 0 : index
    %c0_60 = arith.constant 0 : index
    %151 = vector.load %arg4[%c0_59, %c0_60] : memref<32x32xbf16, #tpu.memory_space<vmem>>, vector<32x32xbf16>
    %cst_61 = arith.constant dense<0.000000e+00> : vector<8x32xf32>
    %152 = tpu.matmul %150, %151, %cst_61 {dimension_numbers = #tpu.dot_dimension_numbers<[1], [0], [0], [1], [0, 0, 1, 1], [], []>} : vector<8x32xbf16>, vector<32x32xbf16>, vector<8x32xf32> -> vector<8x32xf32>
    %153 = arith.addf %1, %152 : vector<8x32xf32>
    %154 = arith.mulf %153, %153 : vector<8x32xf32>
    %cst_62 = arith.constant dense<0.000000e+00> : vector<8xf32>
    %155 = vector.multi_reduction <add>, %154, %cst_62 [1] : vector<8x32xf32> to vector<8xf32>
    %156 = vector.shape_cast %155 : vector<8xf32> to vector<8x1xf32>
    %cst_63 = arith.constant 3.200000e+01 : f32
    %157 = vector.broadcast %cst_63 : f32 to vector<8x1xf32>
    %158 = arith.divf %156, %157 : vector<8x1xf32>
    %cst_64 = arith.constant 9.99999997E-7 : f32
    %159 = vector.broadcast %cst_64 : f32 to vector<8x1xf32>
    %160 = arith.addf %158, %159 : vector<8x1xf32>
    %161 = math.rsqrt %160 : vector<8x1xf32>
    %162 = vector.broadcast %161 : vector<8x1xf32> to vector<8x32xf32>
    %163 = arith.mulf %153, %162 : vector<8x32xf32>
    %c0_65 = arith.constant 0 : index
    %c0_66 = arith.constant 0 : index
    %164 = vector.load %arg5[%c0_65, %c0_66] : memref<1x32xf32, #tpu.memory_space<vmem>>, vector<1x32xf32>
    %165 = vector.broadcast %164 : vector<1x32xf32> to vector<8x32xf32>
    %166 = arith.mulf %163, %165 : vector<8x32xf32>
    %167 = arith.truncf %166 : vector<8x32xf32> to vector<8x32xbf16>
    %c0_67 = arith.constant 0 : index
    %c0_68 = arith.constant 0 : index
    %168 = vector.load %arg6[%c0_67, %c0_68] : memref<32x128xbf16, #tpu.memory_space<vmem>>, vector<32x128xbf16>
    %cst_69 = arith.constant dense<0.000000e+00> : vector<8x128xf32>
    %169 = tpu.matmul %167, %168, %cst_69 {dimension_numbers = #tpu.dot_dimension_numbers<[1], [0], [0], [1], [0, 0, 1, 1], [], []>} : vector<8x32xbf16>, vector<32x128xbf16>, vector<8x128xf32> -> vector<8x128xf32>
    %170 = vector.extract_strided_slice %169 {offsets = [0, 0], sizes = [8, 64], strides = [1, 1]} : vector<8x128xf32> to vector<8x64xf32>
    %171 = vector.extract_strided_slice %169 {offsets = [0, 64], sizes = [8, 64], strides = [1, 1]} : vector<8x128xf32> to vector<8x64xf32>
    %172 = arith.negf %170 : vector<8x64xf32>
    %173 = math.exp %172 : vector<8x64xf32>
    %cst_70 = arith.constant 1.000000e+00 : f32
    %174 = vector.broadcast %cst_70 : f32 to vector<8x64xf32>
    %175 = arith.addf %174, %173 : vector<8x64xf32>
    %176 = arith.divf %174, %175 : vector<8x64xf32>
    %177 = arith.mulf %170, %176 : vector<8x64xf32>
    %178 = arith.mulf %177, %171 : vector<8x64xf32>
    %179 = arith.truncf %178 : vector<8x64xf32> to vector<8x64xbf16>
    %c0_71 = arith.constant 0 : index
    %c0_72 = arith.constant 0 : index
    %180 = vector.load %arg7[%c0_71, %c0_72] : memref<64x32xbf16, #tpu.memory_space<vmem>>, vector<64x32xbf16>
    %cst_73 = arith.constant dense<0.000000e+00> : vector<8x32xf32>
    %181 = tpu.matmul %179, %180, %cst_73 {dimension_numbers = #tpu.dot_dimension_numbers<[1], [0], [0], [1], [0, 0, 1, 1], [], []>} : vector<8x64xbf16>, vector<64x32xbf16>, vector<8x32xf32> -> vector<8x32xf32>
    %182 = arith.addf %153, %181 : vector<8x32xf32>
    %c0_74 = arith.constant 0 : index
    %c0_75 = arith.constant 0 : index
    %c0_76 = arith.constant 0 : index
    %183 = vector.load %arg10[%c0_74, %c0_75, %c0_76] : memref<1x8x32xf32, #tpu.memory_space<vmem>>, vector<1x8x32xf32>
    %184 = vector.shape_cast %183 : vector<1x8x32xf32> to vector<8x32xf32>
    %185 = vector.shape_cast %182 : vector<8x32xf32> to vector<1x8x32xf32>
    tpu.vector_store %arg10[%c0_74, %c0_75, %c0_76], %185 {strides = array<i32>} : memref<1x8x32xf32, #tpu.memory_space<vmem>>, vector<1x8x32xf32>,
    return
  }
  func.func @transform_0(%arg0: i32) -> (i32, i32, i32) {
    %c0_i32 = arith.constant 0 : i32
    %c0_i32_0 = arith.constant 0 : i32
    %c0_i32_1 = arith.constant 0 : i32
    return %arg0, %c0_i32, %c0_i32_0 : i32, i32, i32
  }
  func.func @transform_1(%arg0: i32) -> (i32, i32) {
    %c0_i32 = arith.constant 0 : i32
    %c0_i32_0 = arith.constant 0 : i32
    %c0_i32_1 = arith.constant 0 : i32
    return %c0_i32, %c0_i32_0 : i32, i32
  }
  func.func @transform_2(%arg0: i32) -> (i32, i32) {
    %c0_i32 = arith.constant 0 : i32
    %c0_i32_0 = arith.constant 0 : i32
    %c0_i32_1 = arith.constant 0 : i32
    return %c0_i32, %c0_i32_0 : i32, i32
  }
  func.func @transform_3(%arg0: i32) -> (i32, i32) {
    %c0_i32 = arith.constant 0 : i32
    %c0_i32_0 = arith.constant 0 : i32
    %c0_i32_1 = arith.constant 0 : i32
    return %c0_i32, %c0_i32_0 : i32, i32
  }
  func.func @transform_4(%arg0: i32) -> (i32, i32) {
    %c0_i32 = arith.constant 0 : i32
    %c0_i32_0 = arith.constant 0 : i32
    %c0_i32_1 = arith.constant 0 : i32
    return %c0_i32, %c0_i32_0 : i32, i32
  }
  func.func @transform_5(%arg0: i32) -> (i32, i32) {
    %c0_i32 = arith.constant 0 : i32
    %c0_i32_0 = arith.constant 0 : i32
    %c0_i32_1 = arith.constant 0 : i32
    return %c0_i32, %c0_i32_0 : i32, i32
  }
  func.func @transform_6(%arg0: i32) -> (i32, i32) {
    %c0_i32 = arith.constant 0 : i32
    %c0_i32_0 = arith.constant 0 : i32
    %c0_i32_1 = arith.constant 0 : i32
    return %c0_i32, %c0_i32_0 : i32, i32
  }
  func.func @transform_7(%arg0: i32) -> (i32, i32) {
    %c0_i32 = arith.constant 0 : i32
    %c0_i32_0 = arith.constant 0 : i32
    %c0_i32_1 = arith.constant 0 : i32
    return %c0_i32, %c0_i32_0 : i32, i32
  }
  func.func @transform_8(%arg0: i32) -> (i32, i32) {
    %c0_i32 = arith.constant 0 : i32
    %c0_i32_0 = arith.constant 0 : i32
    %c0_i32_1 = arith.constant 0 : i32
    return %c0_i32, %c0_i32_0 : i32, i32
  }
  func.func @transform_9(%arg0: i32) -> (i32, i32, i32) {
    %c0_i32 = arith.constant 0 : i32
    %c0_i32_0 = arith.constant 0 : i32
    %c0_i32_1 = arith.constant 0 : i32
    return %arg0, %c0_i32, %c0_i32_0 : i32, i32, i32
  }
}

</mosaic_0001>

<bundles_post_ra>
// kernel: tpu_custom_call.1
= control target key start
LH: loop header
LB: loop body
LE: loop exit
PB: predicated region body
PF: predicated region fallthrough
CT: control target
= control target key end

     0   :  { %s1796_s0 = inlined_call_operand.vmem [shape: f32[2,8,32], index: 0, kind: input, shape index: {}]   ;;  %s1797_s1 = inlined_call_operand.hbm [shape: f32[1,32], index: 1, kind: input, shape index: {}]   ;;  %s1798_s2 = inlined_call_operand.vmem [shape: bf16[32,96], index: 2, kind: input, shape index: {}]   ;;  %s1799_s3 = inlined_call_operand.vmem [shape: bf16[32,32], index: 3, kind: input, shape index: {}]   ;;  %s1800_s4 = inlined_call_operand.vmem [shape: f32[1,32], index: 4, kind: input, shape index: {}]   ;;  %s1801_s5 = inlined_call_operand.hbm [shape: bf16[32,128], index: 5, kind: input, shape index: {}]   ;;  %s1802_s6 = inlined_call_operand.vmem [shape: bf16[64,32], index: 6, kind: input, shape index: {}]   ;;  %s1803_s7 = inlined_call_operand.hbm [shape: f32[8,32], index: 7, kind: input, shape index: {}]   ;;  %s1804_s8 = inlined_call_operand.hbm [shape: f32[8,32], index: 8, kind: input, shape index: {}]   ;;  %s1805_s9 = inlined_call_operand.hbm [shape: f32[2,8,32], index: 9, kind: output, shape index: {}]  }
   0x1   :  { %1809 = sst [smem:[#allocation20_spill]] %s1797_s1 }
   0x2   :  { %1810 = sst [smem:[#allocation21_spill]] %s1801_s5 }
   0x3   :  { %14 = vsyncpa [#allocation5], 0 }
   0x4   :  { %15 = vsyncpa [#allocation8], 0 }
   0x5   :  { %16 = vsyncpa [#allocation11], 0 }
   0x6   :  { %17 = vsyncpa [#allocation6], 0 }
   0x7   :  { %19 = vsyncpa [#allocation6 + $0x1], 0  ;;  %s1529_s30 = smov 0   ;;  %s1531_s10 = smov 0  }
   0x8   :  { %s1533_s11 = smov 0   ;;  %s1535_s12 = smov 0  }
   0x9 LB: > { %1811 = sst [smem:[#allocation17_spill]] %s1438_s11  ;;  %s1550_s13 = sadd.s32 4294967295, %s1442_s12   ;;  %s1442_s12 = sphi %s1535_s12, %s1820_s12   ;;  %s1438_s11 = sphi %s1533_s11, %s1822_s11   ;;  %s1434_s10 = sphi %s1531_s10, %s1824_s10   ;;  %s1430_s30 = sphi %s1529_s30, %s1823_s30  }
   0xa   : > { %s1028_s14 = sadd.s32 4294967294, %s1442_s12   ;;  %s1554_s15 = sadd.s32 1, %s1442_s12  }
   0xb   : > { %1812 = sst [smem:[#allocation18_spill]] %s1554_s15  ;;  %s226_s16 = sadd.s32 1, %s1438_s11 }
   0xc   : > { %s223_s17 = ssub.s32 %s1442_s12, %s1554_s15  ;;  %p236_p0 = scmp.ne.s32.totalorder %s1438_s11, %s1434_s10 }
   0xd   : > { %p224_p1 = scmp.eq.s32.totalorder %s223_s17, 0  ;;  %p237_p2 = scmp.eq.s32.totalorder %s1550_s13, 1 }
   0xe   : > { %p242_p3 = scmp.ne.s32.totalorder %s1434_s10, %s1430_s30  ;;  %p243_p4 = scmp.eq.s32.totalorder %s1028_s14, 1 }
   0xf   : > { %s1565_s18 = scalar_select %p224_p1, %s1438_s11, %s226_s16  }
  0x10   : > { %p1567_p5 = por %p237_p2, %p236_p0  ;;  %p1571_p6 = por %p243_p4, %p242_p3 }
  0x11   : > { %1813 = sst [smem:[#allocation19_spill]] %s1565_s18  ;;  %p1029_p7 = scmp.ge.s32.totalorder %s1442_s12, 1 }
  0x12   : > { %p250_p8 = scmp.lt.s32.totalorder %s1442_s12, 3  ;;  %p1148_p9 = scmp.eq.s32.totalorder %s1550_s13, 0 }
  0x13   : > { %s1817_s5 = sld [smem:[#allocation21_spill]]  ;;  %s1448_s25 = smov [#allocation7]  }
  0x14   : > { %p1578_p10 = pnand %p1029_p7, %p250_p8  ;;  %s284_s26 = sshll.u32 %s1448_s25, 4  ;;  %s285_s26 = int_to_ptr.vmem [resolvable:$true] %s284_s26 }
  0x15   : > { %s1819_s1 = sld [smem:[#allocation20_spill]]  ;;  %s1449_s16 = smov 64  }
  0x16   : > { %p1131_p11 = pneg %p1578_p10  ;;  %s1450_s17 = smov 4  }
  0x17   : > { %s1451_s22 = smov [#allocation4]   ;;  %s300_s18 = sshll.u32 %s1803_s7, 4  ;;  %s301_s18 = int_to_ptr.hbm [resolvable:$true] %s300_s18 }
  0x18   : > { %p1589_p12 = pnand %p1148_p9, %p1131_p11  ;;  %s264_s23 = sshll.u32 %s1451_s22, 4  ;;  %s265_s23 = int_to_ptr.vmem [resolvable:$true] %s264_s23 }
  0x19   : > { %s282_s24 = sshll.u32 %s1817_s5, 4  ;;  %s1452_s11 = smov [#allocation9]   ;;  %s283_s24 = int_to_ptr.hbm [resolvable:$true] %s282_s24 }
  0x1a   : > { %1137 = dma.hbm_to_vmem [thread:$0]  (!%p1589_p12), %s283_s24, 256, %s285_s26, [#allocation8], %s1449_s16, %s1449_s16, %s1450_s17  }
  0x1b   : > { %s262_s14 = sshll.u32 %s1819_s1, 4  ;;  %s312_s1 = sshll.u32 %s1804_s8, 4  ;;  %s263_s14 = int_to_ptr.hbm [resolvable:$true] %s262_s14  ;;  %s313_s1 = int_to_ptr.hbm [resolvable:$true] %s312_s1 }
  0x1c   : > { %1134 = dma.hbm_to_vmem [thread:$0]  (!%p1589_p12), %s263_s14, 16, %s265_s23, [#allocation5]  }
  0x1d   : > { %s302_s15 = sshll.u32 %s1452_s11, 4  ;;  %s1453_s24 = smov [#allocation10]   ;;  %s303_s15 = int_to_ptr.vmem [resolvable:$true] %s302_s15 }
  0x1e   : > { %1140 = dma.hbm_to_vmem [thread:$0]  (!%p1589_p12), %s301_s18, 128, %s303_s15, [#allocation8]  }
  0x1f   : > { %s314_s26 = sshll.u32 %s1453_s24, 4  ;;  %334 = sbr.rel (%p1578_p10) target bundleno = 1981 (0x7bd), region = 56  ;;  %s315_s26 = int_to_ptr.vmem [resolvable:$true] %s314_s26 }
  0x20   : > { %1143 = dma.hbm_to_vmem [thread:$0]  (!%p1589_p12), %s313_s1, 128, %s315_s26, [#allocation11]  }
  0x24   : > { %1413 = dma.done.wait (%p1148_p9), [#allocation5], 16  }
  0x25   : > { %1415 = vsyncadd (%p1148_p9), [#allocation5], 4294967280 }
  0x26   : > { %1417 = dma.done.wait (%p1148_p9), [#allocation8], 384  }
  0x27   : > { %1419 = vsyncadd (%p1148_p9), [#allocation8], 4294966912 }
  0x28   : > { %1421 = dma.done.wait (%p1148_p9), [#allocation11], 128  }
  0x29   : > { %1423 = vsyncadd (%p1148_p9), [#allocation11], 4294967168  ;;  %p385_p13 = scmp.lt.s32.totalorder %s1550_s13, 1  ;;  %vm392_vm0 = vcmask 261120   ;;  %s382_s21 = sand.u32 1, %s1434_s10   ;;  %v1454_v3 = vmov 32.0  }
  0x2a   : > { %s1637_s27 = sshll.u32 %s382_s21, 3  ;;  %1229 = vrcp.f32 %v1454_v3  ;;  %v1100_v7 = vld [vmem:[%s1798_s2 + $0x8] sm:$0xff]  ;;  %v1099_v9 = vld [vmem:[%s1798_s2] sm:$0xff]  ;;  %s1455_s23 = smov 84   ;;  %vm466_vm5 = vcmask 31744   ;;  %v454_v44 = vld [vmem:[#allocation9] sm:$0xff] }
  0x2b   : > { %s386_s1 = scalar_select %p385_p13, %s1550_s13, 1  ;;  %447 = vmatpush.bf16.msra.mxu0 %v1100_v7  ;;  %v1228_v21 = vld [vmem:[#allocation4] ss:$0 sm:$0xff]  ;;  %vm501_vm6 = vcmask 64512   ;;  %vm503_vm7 = vcmask 130048   ;;  %vm505_vm8 = vcmask 195584  }
  0x2c   : > { %s1456_s25 = smov 92   ;;  %s1457_s28 = smov 68   ;;  %v455_v55 = vld [vmem:[#allocation10] sm:$0xff]  ;;  %vm564_vm9 = vcmask 60416  }
  0x2d   : > { %s1041_s5 = sshll.u32 %s386_s1, 3  ;;  %s1458_s29 = smov 76  }
  0x2e   : > { %s388_s18 = scalar_lea.vmem %s1796_s0, %s1041_s5  ;;  %s1459_s24 = smov 100  }
  0x2f   : > { %v1629_v0 = vld [vmem:[%s388_s18] sm:$0xff]  ;;  %448 = vmatpush.bf16.msra.mxu0 %v1099_v9  ;;  %s1460_s26 = smov 116   ;;  %s1461_s1 = smov 124  }
  0x30   : > { %v391_v1 = vmul.f32 %v1629_v0, %v1629_v0  ;;  %v1230_v4 = vpop.eup %1229  ;;  %s1462_s5 = smov 108   ;;  %s1463_s11 = smov 8  }
  0x31   : > { %v397_v5 = vmul.f32 32.0, %v1230_v4  ;;  %vm401_vm1 = vweird.f32 %v1230_v4  ;;  %s1464_s15 = smov 16   ;;  %s1465_s18 = smov 24  }
  0x32   : > { %v393_v2 = vsel %vm392_vm0, %v391_v1, 0.0  ;;  %s1466_s14 = smov 4   ;;  %s1467_s16 = smov 32  }
  0x33   : > { %394 = vadd.xlane.f32.xlu0 %v393_v2  ;;  %v398_v6 = vsub.f32 1.0, %v397_v5  ;;  %s1468_s17 = smov 64   ;;  %s1469_s22 = smov 56  }
  0x35   : > { %v399_v8 = vmul.f32 %v1230_v4, %v398_v6 }
  0x37   : > { %v400_v10 = vadd.f32 %v1230_v4, %v399_v8 }
  0x39   : > { %v1645_v11 = vsel %vm401_vm1, %v1230_v4, %v400_v10 }
  0xa6   : > { %v395_v12 = vpop.xlane.xlu0 %394 }
  0xa7   : > { %v403_v13 = vmul.f32 %v1645_v11, %v395_v12 }
  0xa9   : > { %v404_v14 = vadd.f32 1e-06, %v403_v13 }
  0xab   : > { %1231 = vrsqrt.f32 %v404_v14  ;;  %vm411_vm3 = vweird.f32 %v404_v14 }
  0xb1   : > { %v1232_v15 = vpop.eup %1231 }
  0xb2   : > { %v406_v16 = vmul.f32 %v1232_v15, %v404_v14  ;;  %vm412_vm2 = vweird.f32 %v1232_v15 }
  0xb3   : > { %vm413_vm4 = vmor %vm411_vm3, %vm412_vm2 }
  0xb4   : > { %v407_v17 = vmul.f32 %v1232_v15, %v406_v16 }
  0xb6   : > { %v408_v18 = vmul.f32 0.5, %v407_v17 }
  0xb8   : > { %v409_v19 = vsub.f32 1.5, %v408_v18 }
  0xba   : > { %v410_v20 = vmul.f32 %v1232_v15, %v409_v19 }
  0xbc   : > { %v414_v22 = vsel %vm413_vm4, %v1232_v15, %v410_v20 }
  0xbd   : > { %v415_v23 = vmul.f32 %v414_v22, %v1629_v0 }
  0xbf   : > { %v420_v24 = vmul.f32 %v1228_v21, %v415_v23  ;;  %v626_v23 = vlaneseq }
  0xc1   : > { %v421_v25 = vpack.c.bf16 %v420_v24, %v420_v24  ;;  %v627_v24 = vshrl.u32 %v626_v23, 7 }
  0xc3   : > { %1050 = vmatmul.msk.bf16.vlgmr.msra.gmra.mxu0 %vm392_vm0, %v421_v25  ;;  %v629_v25 = vand.u32 127, %v626_v23 }
  0xc5   : > { %vm630_vm10 = vcmp.le.s32.totalorder %v629_v25, %v627_v24 }
 0x140   : > { %v1650_v26 = vpop.f32.mrf.mxu0 }
 0x141   : > { %531 = vrot.lane.b32.xlu2 %v1650_v26, %s1455_s23  ;;  %524 = vrot.lane.b32.xlu1 %v1650_v26, %s1456_s25  ;;  %v457_v27 = vsub.f32 0.0, %v1650_v26  ;;  %v573_v48 = vpack.c.bf16 %v1650_v26, %v1650_v26  ;;  %v456_v8 = vmul.f32 %v454_v44, %v1650_v26 }
 0x143   : > { %521 = vrot.lane.b32.xlu0 %v457_v27, %s1455_s23  ;;  %s1470_s23 = smov 48  }
 0x148   : > { %v452_v28 = vpop.f32.mrf.mxu0 }
 0x149   : > { %535 = vrot.lane.b32.xlu2 %v457_v27, %s1457_s28  ;;  %528 = vrot.lane.b32.xlu1 %v457_v27, %s1458_s29  ;;  %s1472_s28 = smov 120  }
 0x14b   : > { %517 = vrot.lane.b32.xlu0 %v1650_v26, %s1459_s24 }
 0x151   : > { %478 = vrot.lane.b32.xlu2 %v1650_v26, %s1460_s26  ;;  %538 = vrot.lane.b32.xlu1 %v1650_v26, %s1458_s29  ;;  %s1473_s29 = smov 112  }
 0x159   : > { %468 = vrot.lane.b32.xlu2 %v457_v27, %s1460_s26  ;;  %471 = vrot.lane.b32.xlu1 %v1650_v26, %s1461_s1  ;;  %s1475_s26 = smov 96  }
 0x161   : > { %514 = vrot.lane.b32.xlu2 %v457_v27, %s1456_s25  ;;  %475 = vrot.lane.b32.xlu1 %v457_v27, %s1462_s5  ;;  %s1471_s25 = smov 40  }
 0x169   : > { %485 = vrot.lane.b32.xlu2 %v1650_v26, %s1462_s5  ;;  %482 = vrot.lane.b32.xlu1 %v457_v27, %s1459_s24  ;;  %s1474_s24 = smov 104   ;;  %s1477_s5 = smov 80  }
 0x171   : > { %459 = vrot.lane.b32.xlu2 %v457_v27, %s1461_s1  ;;  %s1476_s1 = smov 88  }
 0x19b   : > { %v532_v29 = vpop.permute.xlu2 %531 }
 0x1a3   : > { %v536_v30 = vpop.permute.xlu2 %535 }
 0x1ab   : > { %v479_v35 = vpop.permute.xlu2 %478 }
 0x1b3   : > { %v525_v31 = vpop.permute.xlu1 %524  ;;  %v469_v39 = vpop.permute.xlu2 %468 }
 0x1b5   : > { %v522_v32 = vpop.permute.xlu0 %521 }
 0x1b6   : > { %v527_v33 = vsel %vm466_vm5, %v522_v32, %v525_v31 }
 0x1b7   : > { %543 = vrot.lane.b32.xlu0 %v527_v33, %s1463_s11 }
 0x1bb   : > { %v529_v34 = vpop.permute.xlu1 %528  ;;  %v515_v42 = vpop.permute.xlu2 %514 }
 0x1bc   : > { %v534_v36 = vsel %vm466_vm5, %v529_v34, %v532_v29 }
 0x1bd   : > { %v518_v50 = vpop.permute.xlu0 %517 }
 0x1be   : > { %v520_v53 = vsel %vm466_vm5, %v515_v42, %v518_v50 }
 0x1bf   : > { %547 = vrot.lane.b32.xlu0 %v534_v36, %s1464_s15 }
 0x1c3   : > { %v539_v37 = vpop.permute.xlu1 %538  ;;  %v486_v46 = vpop.permute.xlu2 %485 }
 0x1c4   : > { %v541_v38 = vsel %vm466_vm5, %v536_v30, %v539_v37 }
 0x1c5   : > { %551 = vrot.lane.b32.xlu1 %v541_v38, %s1465_s18 }
 0x1c7   : > { %463 = vrot.lane.b32.xlu0 %v1650_v26, %s1466_s14  ;;  %s1478_s14 = smov 72  }
 0x1cb   : > { %v472_v40 = vpop.permute.xlu1 %471  ;;  %v460_v61 = vpop.permute.xlu2 %459 }
 0x1cc   : > { %v474_v41 = vsel %vm466_vm5, %v469_v39, %v472_v40 }
 0x1cd   : > { %490 = vrot.lane.b32.xlu1 %v474_v41, %s1463_s11 }
 0x1d3   : > { %v476_v43 = vpop.permute.xlu1 %475 }
 0x1d4   : > { %v481_v45 = vsel %vm466_vm5, %v476_v43, %v479_v35 }
 0x1d5   : > { %510 = vrot.lane.b32.xlu1 %v454_v44, %s1467_s16  ;;  %494 = vrot.lane.b32.xlu2 %v481_v45, %s1464_s15 }
 0x1db   : > { %v483_v47 = vpop.permute.xlu1 %482 }
 0x1dc   : > { %v488_v49 = vsel %vm466_vm5, %v483_v47, %v486_v46 }
 0x1dd   : > { %575 = vrot.lane.b32.xlu1 %v573_v48, %s1468_s17  ;;  %498 = vrot.lane.b32.xlu0 %v488_v49, %s1465_s18 }
 0x1e5   : > { %591 = vrot.lane.b32.xlu1 %v573_v48, %s1469_s22  ;;  %s1699_s22 = smov 0  }
 0x1ed   : > { %606 = vrot.lane.b32.xlu1 %v573_v48, %s1470_s23 }
 0x1f5   : > { %621 = vrot.lane.b32.xlu1 %v573_v48, %s1471_s25 }
 0x229   : > { %v544_v51 = vpop.permute.xlu0 %543 }
 0x22a   : > { %v554_v54 = vsel %vm501_vm6, %v520_v53, %v544_v51 }
 0x22f   : > { %v495_v3 = vpop.permute.xlu2 %494 }
 0x231   : > { %v548_v52 = vpop.permute.xlu0 %547 }
 0x232   : > { %v555_v56 = vsel %vm503_vm7, %v554_v54, %v548_v52 }
 0x237   : > { %v552_v57 = vpop.permute.xlu1 %551 }
 0x238   : > { %v556_v58 = vsel %vm505_vm8, %v555_v56, %v552_v57 }
 0x239   : > { %v557_v59 = vmul.f32 %v556_v58, %v455_v55  ;;  %v464_v62 = vpop.permute.xlu0 %463 }
 0x23a   : > { %v467_v1 = vsel %vm466_vm5, %v460_v61, %v464_v62 }
 0x23b   : > { %559 = vrot.lane.b32.xlu2 %v557_v59, %s1467_s16  ;;  %s384_s16 = scalar_lea.vmem [#allocation12], %s1637_s27 }
 0x23f   : > { %v491_v60 = vpop.permute.xlu1 %490 }
 0x240   : > { %v502_v2 = vsel %vm501_vm6, %v467_v1, %v491_v60 }
 0x241   : > { %v504_v5 = vsel %vm503_vm7, %v502_v2, %v495_v3 }
 0x247   : > { %v511_v63 = vpop.permute.xlu1 %510 }
 0x248   : > { %v513_v16 = vmul.f32 %v511_v63, %v1650_v26 }
 0x24f   : > { %v576_v4 = vpop.permute.xlu1 %575  ;;  %v499_v6 = vpop.permute.xlu0 %498 }
 0x250   : > { %579 = vst.msk [vmem:[#allocation2 + $0x20] sm:$0xf] %vm564_vm9, %v576_v4  ;;  %v506_v7 = vsel %vm505_vm8, %v504_v5, %v499_v6 }
 0x251   : > { %v507_v9 = vmul.f32 %v506_v7, %v455_v55 }
 0x253   : > { %v508_v10 = vadd.f32 %v507_v9, %v456_v8 }
 0x255   : > { %v563_v12 = vpack.c.bf16 %v508_v10, %v508_v10 }
 0x257   : > { %565 = vst.msk [vmem:[#allocation2] sm:$0xf] %vm564_vm9, %v563_v12  ;;  %v592_v13 = vpop.permute.xlu1 %591  ;;  %581 = vrot.lane.b32.xlu2 %v563_v12, %s1472_s28 }
 0x258   : > { %595 = vst.msk [vmem:[#allocation2 + $0x24] sm:$0xf] %vm564_vm9, %v592_v13 }
 0x25f   : > { %v607_v14 = vpop.permute.xlu1 %606  ;;  %596 = vrot.lane.b32.xlu2 %v563_v12, %s1473_s29 }
 0x260   : > { %610 = vst.msk [vmem:[#allocation2 + $0x28] sm:$0xf] %vm564_vm9, %v607_v14 }
 0x267   : > { %v622_v15 = vpop.permute.xlu1 %621  ;;  %611 = vrot.lane.b32.xlu2 %v563_v12, %s1474_s24 }
 0x268   : > { %625 = vst.msk [vmem:[#allocation2 + $0x2c] sm:$0xf] %vm564_vm9, %v622_v15 }
 0x295   : > { %v560_v17 = vpop.permute.xlu2 %559 }
 0x296   : > { %v562_v18 = vadd.f32 %v560_v17, %v513_v16 }
 0x298   : > { %v566_v19 = vpack.c.bf16 %v562_v18, %v562_v18 }
 0x29a   : > { %568 = vrot.lane.b32.xlu0 %v566_v19, %s1475_s26 }
 0x2a2   : > { %586 = vrot.lane.b32.xlu0 %v566_v19, %s1476_s1 }
 0x2aa   : > { %601 = vrot.lane.b32.xlu0 %v566_v19, %s1477_s5 }
 0x2b1   : > { %v582_v20 = vpop.permute.xlu2 %581 }
 0x2b2   : > { %585 = vst.msk [vmem:[#allocation2 + $0x4] sm:$0xf] %vm564_vm9, %v582_v20  ;;  %616 = vrot.lane.b32.xlu0 %v566_v19, %s1478_s14 }
 0x2b9   : > { %v597_v21 = vpop.permute.xlu2 %596 }
 0x2ba   : > { %600 = vst.msk [vmem:[#allocation2 + $0x8] sm:$0xf] %vm564_vm9, %v597_v21 }
 0x2c1   : > { %v612_v22 = vpop.permute.xlu2 %611 }
 0x2c2   : > { %615 = vst.msk [vmem:[#allocation2 + $0xc] sm:$0xf] %vm564_vm9, %v612_v22 }
 0x30c   : > { %v569_v26 = vpop.permute.xlu0 %568 }
 0x30d   : > { %572 = vst.msk [vmem:[#allocation2 + $0x10] sm:$0xf] %vm564_vm9, %v569_v26 }
 0x314   : > { %v587_v27 = vpop.permute.xlu0 %586 }
 0x315   : > { %590 = vst.msk [vmem:[#allocation2 + $0x14] sm:$0xf] %vm564_vm9, %v587_v27 }
 0x31c   : > { %v602_v28 = vpop.permute.xlu0 %601 }
 0x31d   : > { %605 = vst.msk [vmem:[#allocation2 + $0x18] sm:$0xf] %vm564_vm9, %v602_v28 }
 0x324   : > { %v617_v29 = vpop.permute.xlu0 %616 }
 0x325   : > { %620 = vst.msk [vmem:[#allocation2 + $0x1c] sm:$0xf] %vm564_vm9, %v617_v29 }
 0x326 LB: >> { %s1051_s23 = sshll.u32 %s1446_s22, 2  ;;  %vm681_vm11 = vcmask 1043456   ;;  %s636_s22 = sadd.s32 1, %s1446_s22   ;;  %s1446_s22 = sphi %s1699_s22, %s636_s22  }
 0x327   : >> { %s638_s25 = scalar_lea.vmem [#allocation2], %s1051_s23  ;;  %s702_s28 = scalar_lea.vmem [#allocation3], %s1051_s23 }
 0x328   : >> { %p633_p0 = scmp.ge.s32.totalorder %s636_s22, 4  }
 0x329   : > { %v1102_v59 = vld [vmem:[%s1799_s3 + $0x8] sm:$0xff] (%p633_p0)  ;;  %v1101_v60 = vld [vmem:[%s1799_s3] sm:$0xff] (%p633_p0)  ;;  %v1108_v25 = vld [vmem:[%s1802_s6 + $0x18] sm:$0xff] (%p633_p0)  ;;  %vm878_vm4 = vcmask (%p633_p0), 523264   ;;  %s1384_s23 = scalar_lea.hbm (%p633_p0), %s1805_s9, 16 }
 0x32a   : > { %v1104_v10 = vld [vmem:[#allocation7 + $0x8] sm:$0xff] (%p633_p0)  ;;  %v1103_v12 = vld [vmem:[#allocation7] sm:$0xff] (%p633_p0)  ;;  %v1237_v21 = vld [vmem:[%s1800_s4] ss:$0 sm:$0xff] (%p633_p0)  ;;  %886 = vmatpush.bf16.msra.mxu2 (%p633_p0), %v1108_v25 }
 0x32b   : > { %v1107_v26 = vld [vmem:[%s1802_s6 + $0x10] sm:$0xff] (%p633_p0)  ;;  %v1106_v27 = vld [vmem:[%s1802_s6 + $0x8] sm:$0xff] (%p633_p0) }
 0x32c   : >> { %v1053_v30 = vld [vmem:[%s638_s25 + $0x10] sm:$0xf]  ;;  %v639_v32 = vld [vmem:[%s638_s25] sm:$0xf] }
 0x32d   : >> { %v652_v31 = vsel %vm501_vm6, %v1053_v30, 0  ;;  %v1055_v37 = vld [vmem:[%s638_s25 + $0x20] sm:$0xf] }
 0x32e   : >> { %661 = vmatpush.bf16.xpose.msra.mxu0 %v652_v31  ;;  %v683_v38 = vsel %vm681_vm11, %v1055_v37, 0  ;;  %887 = vmatpush.bf16.msra.mxu2 (%p633_p0), %v1107_v26 }
 0x32f   : >> { %692 = vmatpush.bf16.msra.mxu1 %v683_v38 }
 0x332   : > { %888 = vmatpush.bf16.msra.mxu2 (%p633_p0), %v1106_v27 }
 0x335   : >> { %1056 = vmatmul.msk.bf16.vlgmr.msra.gmra.mxu0 %vm501_vm6, %v639_v32 }
 0x336   : > { %757 = vmatpush.bf16.msra.mxu0 (%p633_p0), %v1102_v59 }
 0x33a   : > { %758 = vmatpush.bf16.msra.mxu0 (%p633_p0), %v1101_v60 }
 0x3b2   : >> { %v663_v33 = vpop.f32.mrf.mxu0 }
 0x3b3   : >> { %v667_v34 = vsel %vm630_vm10, %v663_v33, -1e+30  ;;  %v1105_v33 = vld [vmem:[%s1802_s6] sm:$0xff] (%p633_p0) }
 0x3b4   : >> { %v668_v35 = vsel %vm501_vm6, %v667_v34, -inf  ;;  %889 = vmatpush.bf16.msra.mxu2 (%p633_p0), %v1105_v33 }
 0x3b5   : >> { %669 = vmax.xlane.f32.xlu0 %v668_v35 }
 0x3ba   : >> { %v665_v36 = vpop.f32.mrf.mxu0 }
 0x428   : >> { %v670_v39 = vpop.xlane.xlu0 %669 }
 0x429   : >> { %v671_v40 = vsub.f32 %v667_v34, %v670_v39 }
 0x42b   : >> { %v672_v41 = vmul.f32 1.442695, %v671_v40 }
 0x42d   : >> { %1233 = vpow2.f32 %v672_v41 }
 0x433   : >> { %v1234_v42 = vpop.eup %1233 }
 0x434   : >> { %v674_v43 = vsel %vm501_vm6, %v1234_v42, 0.0  ;;  %v677_v44 = vpack.c.bf16 %v1234_v42, %v1234_v42 }
 0x435   : >> { %675 = vadd.xlane.f32.xlu0 %v674_v43 }
 0x436   : >> { %1057 = vmatmul.msk.bf16.vlgmr.msra.gmra.mxu1 %vm501_vm6, %v677_v44 }
 0x437   : > { %813 = vmatpush.bf16.msra.mxu1 (%p633_p0), %v1104_v10 }
 0x43b   : > { %814 = vmatpush.bf16.msra.mxu1 (%p633_p0), %v1103_v12 }
 0x4a8   : >> { %v676_v45 = vpop.xlane.xlu0 %675 }
 0x4a9   : >> { %1235 = vrcp.f32 %v676_v45 }
 0x4af   : >> { %v1236_v46 = vpop.eup %1235 }
 0x4b3   : >> { %v694_v47 = vpop.f32.mrf.mxu1 }
 0x4b4   : >> { %v699_v48 = vmul.f32 %v1236_v46, %v694_v47 }
 0x4b6   : >> { %v700_v49 = vpack.c.bf16 %v699_v48, %v699_v48 }
 0x4b7   : > { %635 = sbr.rel (!%p633_p0) target bundleno = 806 (0x326), region = 133 }
 0x4b8   : >> { %703 = vst.msk [vmem:[%s702_s28] sm:$0xf] %vm564_vm9, %v700_v49 }
 0x4bb   : >> { %v696_v50 = vpop.f32.mrf.mxu1 }
 0x4bf   : > { %v706_v51 = vld [vmem:[#allocation3 + $0x4] sm:$0xf]  ;;  %v1110_v52 = vld [vmem:[#allocation3 + $0x8] sm:$0xff]   ;;  %v704_v62 = vld [vmem:[#allocation3] sm:$0xf] }
 0x4c0   : > { %v712_v53 = vunpack.c.l.b16 %v706_v51  ;;  %v1112_v54 = vunpack.c.h.b16 %v1110_v52  ;;  %v1111_v57 = vunpack.c.l.b16 %v1110_v52 }
 0x4c2   : > { %v713_v55 = vpack.c.b16 %v712_v53, %v712_v53  ;;  %v723_v56 = vpack.c.b16 %v1112_v54, %v1112_v54  ;;  %v718_v58 = vpack.c.b16 %v1111_v57, %v1111_v57 }
 0x4c4   : > { %714 = vrot.lane.b32.xlu0 %v713_v55, %s1463_s11  ;;  %724 = vrot.lane.b32.xlu1 %v723_v56, %s1465_s18  ;;  %s910_s11 = sshll.u32 %s384_s16, 4  ;;  %s898_s18 = scalar_lea.sflag [#allocation6], %s382_s21  ;;  %s911_s11 = int_to_ptr.vmem [resolvable:$true] %s910_s11 }
 0x4cc   : > { %719 = vrot.lane.b32.xlu0 %v718_v58, %s1464_s15 }
 0x536   : > { %v715_v61 = vpop.permute.xlu0 %714  ;;  %v725_v63 = vpop.permute.xlu1 %724 }
 0x537   : > { %v728_v1 = vsel %vm501_vm6, %v704_v62, %v715_v61 }
 0x53e   : > { %v720_v2 = vpop.permute.xlu0 %719 }
 0x53f   : > { %v730_v3 = vsel %vm503_vm7, %v728_v1, %v720_v2 }
 0x540   : > { %v732_v4 = vsel %vm505_vm8, %v730_v3, %v725_v63 }
 0x541   : > { %1067 = vmatmul.msk.bf16.vlgmr.msra.gmra.mxu0 %vm392_vm0, %v732_v4 }
 0x5be   : > { %v760_v5 = vpop.f32.mrf.mxu0 }
 0x5bf   : > { %v1733_v6 = vadd.f32 %v760_v5, %v1629_v0 }
 0x5c1   : > { %v765_v7 = vmul.f32 %v1733_v6, %v1733_v6 }
 0x5c3   : > { %v766_v8 = vsel %vm392_vm0, %v765_v7, 0.0 }
 0x5c4   : > { %767 = vadd.xlane.f32.xlu1 %v766_v8 }
 0x5c6   : > { %v762_v9 = vpop.f32.mrf.mxu0 }
 0x637   : > { %v768_v13 = vpop.xlane.xlu1 %767 }
 0x638   : > { %v769_v14 = vmul.f32 %v768_v13, %v1645_v11 }
 0x63a   : > { %v770_v15 = vadd.f32 1e-06, %v769_v14 }
 0x63c   : > { %1238 = vrsqrt.f32 %v770_v15  ;;  %vm777_vm13 = vweird.f32 %v770_v15 }
 0x642   : > { %v1239_v16 = vpop.eup %1238 }
 0x643   : > { %v772_v17 = vmul.f32 %v1239_v16, %v770_v15  ;;  %vm778_vm12 = vweird.f32 %v1239_v16 }
 0x644   : > { %vm779_vm14 = vmor %vm777_vm13, %vm778_vm12 }
 0x645   : > { %v773_v0 = vmul.f32 %v1239_v16, %v772_v17 }
 0x647   : > { %v774_v18 = vmul.f32 0.5, %v773_v0 }
 0x649   : > { %v775_v19 = vsub.f32 1.5, %v774_v18 }
 0x64b   : > { %v776_v20 = vmul.f32 %v1239_v16, %v775_v19 }
 0x64d   : > { %v780_v22 = vsel %vm779_vm14, %v1239_v16, %v776_v20 }
 0x64e   : > { %v781_v23 = vmul.f32 %v780_v22, %v1733_v6 }
 0x650   : > { %v786_v24 = vmul.f32 %v1237_v21, %v781_v23 }
 0x652   : > { %v787_v11 = vpack.c.bf16 %v786_v24, %v786_v24 }
 0x654   : > { %1076 = vmatmul.msk.bf16.vlgmr.msra.gmra.mxu1 %vm392_vm0, %v787_v11 }
 0x6d1   : > { %v816_v28 = vpop.f32.mrf.mxu1 }
 0x6d2   : > { %841 = vrot.lane.b32.xlu2 %v816_v28, %s1468_s17  ;;  %v1077_v30 = vmul.f32 -1.442695, %v816_v28  ;;  %s1096_s17 = sshll.u32 %s1550_s13, 3 }
 0x6d3   : > { %s908_s1 = scalar_lea.hbm %s1805_s9, %s1096_s17 }
 0x6d4   : > { %1240 = vpow2.f32 %v1077_v30  ;;  %s912_s15 = sshll.u32 %s908_s1, 4  ;;  %s913_s15 = int_to_ptr.hbm [resolvable:$true] %s912_s15 }
 0x6d5   : > { %s1378_s5 = sshra.s32 %s913_s15, 4  ;;  %s1379_s5 = int_to_ptr.hbm [resolvable:$true] %s1378_s5 }
 0x6d6   : > { %s1380_s13 = scalar_lea.hbm %s1379_s5, 8  ;;  %p1385_p4 = scmp.lt.s32.totalorder %s1379_s5, %s1805_s9 }
 0x6d7   : > { %p1381_p1 = scmp.ne.s32.totalorder %s1379_s5, %s1380_s13  ;;  %p1386_p7 = scmp.lt.s32.totalorder %s1384_s23, %s1380_s13 }
 0x6d9   : > { %v818_v29 = vpop.f32.mrf.mxu1  ;;  %p1382_p2 = pnand %p1381_p1, %p1567_p5  ;;  %p1387_p8 = por %p1386_p7, %p1385_p4 }
 0x6da   : > { %v1241_v31 = vpop.eup %1240 }
 0x6db   : > { %v823_v32 = vadd.f32 1.0, %v1241_v31  ;;  %p1383_p3 = pneg %p1382_p2 }
 0x6dd   : > { %1242 = vrcp.f32 %v823_v32  ;;  %v835_v39 = vand.u32 2147483648, %v823_v32  ;;  %vm829_vm1 = vweird.f32 %v823_v32  ;;  %v833_v40 = vand.u32 2147483647, %v823_v32  ;;  %p1388_p9 = pnand %p1387_p8, %p1383_p3 }
 0x6df   : > { %v836_v42 = vor.u32 1.1754944e-38, %v835_v39  ;;  %vm834_vm3 = vcmp.eq.f32.partialorder %v833_v40, 8.507059e+37 }
 0x6e3   : > { %v1243_v34 = vpop.eup %1242 }
 0x6e4   : > { %v825_v35 = vmul.f32 %v1243_v34, %v823_v32  ;;  %vm830_vm15 = vweird.f32 %v1243_v34 }
 0x6e5   : > { %vm831_vm2 = vmor %vm829_vm1, %vm830_vm15 }
 0x6e6   : > { %v826_v36 = vsub.f32 1.0, %v825_v35 }
 0x6e8   : > { %v827_v37 = vmul.f32 %v1243_v34, %v826_v36 }
 0x6ea   : > { %v828_v38 = vadd.f32 %v1243_v34, %v827_v37 }
 0x6ec   : > { %v832_v41 = vsel %vm831_vm2, %v1243_v34, %v828_v38 }
 0x6ed   : > { %v837_v43 = vsel %vm834_vm3, %v836_v42, %v832_v41 }
 0x6ee   : > { %v839_v44 = vmul.f32 %v837_v43, %v816_v28 }
 0x72c   : > { %v842_v45 = vpop.permute.xlu2 %841 }
 0x72d   : > { %v844_v46 = vmul.f32 %v842_v45, %v839_v44 }
 0x72f   : > { %v845_v47 = vpack.c.bf16 %v844_v46, %v844_v46 }
 0x731   : > { %1094 = vmatmul.msk.bf16.vlgmr.msra.gmra.mxu2 %vm878_vm4, %v845_v47 }
 0x7b4   : > { %v891_v48 = vpop.f32.mrf.mxu2 }
 0x7b5   : > { %v895_v49 = vadd.f32 %v891_v48, %v1733_v6 }
 0x7b7   : > { %896 = vst.msk [vmem:[%s384_s16] sm:$0xff] %vm392_vm0, %v895_v49 }
 0x7b8   : > { %1391 = shalt.err (!%p1388_p9)
}
 0x7b9   : > { %1129 = dma.vmem_to_hbm [thread:$0]  (%p1567_p5), %s911_s11, 128, %s913_s15, %s898_s18  }
 0x7bc   : > { %v893_v50 = vpop.f32.mrf.mxu2 }
 0x7bd PF: > { %p1156_p10 = scmp.ge.s32.totalorder %s1442_s12, 2  ;;  %s924_s21 = sand.u32 1, %s1430_s30  }
 0x7be   : > { %s925_s27 = scalar_lea.sflag [#allocation6], %s924_s21 }
 0x7bf   : > { %p1145_p11 = pnand %p1156_p10, %p1571_p6 }
 0x7c1   : > { %p1146_p12 = pneg %p1145_p11 }
 0x7c3   : > { %1425 = dma.done.wait (%p1146_p12), %s925_s27, 128  }
 0x7c4   : > { %1427 = vsyncadd (%p1146_p12), %s925_s27, 4294967168  ;;  %s1820_s12 = sld [smem:[#allocation18_spill]]  ;;  %s1823_s30 = smov %s1434_s10 }
 0x7c5   : > { %s1821_s16 = sld [smem:[#allocation17_spill]] }
 0x7c6   : > { %s1822_s11 = sld [smem:[#allocation19_spill]] }
 0x7ca   : > { %p22_p13 = scmp.ge.s32.totalorder %s1820_s12, 4  }
 0x7cb   : > { %s1824_s10 = smov %s1821_s16 }
 0x7cc   :  { %24 = sbr.rel (!%p22_p13) target bundleno = 9 (0x9), region = 144 }
 0x7d1   :  { %931 = vsyncpa [#allocation5], 1 }
 0x7d2   :  { %933 = vsyncpa [#allocation5 + $0x1], 1 }
 0x7d3   :  { %934 = vsyncpa [#allocation8], 1 }
 0x7d4   :  { %935 = vsyncpa [#allocation11], 1 }
 0x7d5   :  { %936 = vsyncpa [#allocation6], 1 }
 0x7d6   :  { %938 = vsyncpa [#allocation6 + $0x1], 1 }

</bundles_post_ra>
